<compile_context>
chip_gen: v7x
topology: tpu7x:2x2x1
jax: 0.10.0
libtpu: 0.0.40
codegen_flags: <defaults>
</compile_context>

<pallas_src>
import functools

import jax
import jax.numpy as jnp
from jax.experimental import pallas as pl
from jax.experimental.pallas import tpu as pltpu

BN_EPS = 1e-5


# ---------------------------------------------------------------------------
# Fused kernel: depthwise conv + shift + ReLU6 + 1x1 conv (MXU) + shift.
# One grid step handles a band of `tHo` output rows of one image.
# ---------------------------------------------------------------------------
def _sepconv_kernel(x_ref, w_dw_ref, sh_dw_ref, w_pw_ref, sh_pw_ref, o_ref,
                    *, K, stride, tHo, Wo):
    hb = pl.program_id(1)

    step_rows = tHo * stride
    row0 = hb * step_rows
    if step_rows % 8 == 0:
        row0 = pl.multiple_of(row0, 8)
    band_h = (tHo - 1) * stride + K            # input rows needed for this band

    # The padded image block is resident in VMEM (constant block index along
    # the band axis, so it is fetched once per image); slice out the row band.
    x = x_ref[0, pl.ds(row0, band_h), :, :]    # (band_h, Wp, C)
    w = w_dw_ref[...]                          # (K, K, C), BN scale pre-folded
    C = x.shape[-1]

    # ---- depthwise conv (pure VPU multiply-adds, K is tiny & static) ------
    acc = jnp.zeros((tHo, Wo, C), jnp.float32)
    for i in range(K):
        for j in range(K):
            if stride == 1:
                # contiguous slices: no strided gather along the sublane dim
                patch = x[i:i + tHo, j:j + Wo, :]
            else:
                # TODO(synk): for stride>1 hot paths, restructure so the stride
                # is applied via per-row pl.ds instead of a strided W slice.
                patch = x[i:i + (tHo - 1) * stride + 1:stride,
                          j:j + (Wo - 1) * stride + 1:stride, :]
            acc = acc + patch.astype(jnp.float32) * w[i, j, :].astype(jnp.float32)

    # conv_dw bias + BN shift (scale already folded into w), then ReLU6.
    y = jnp.clip(acc + sh_dw_ref[...], 0.0, 6.0)

    # ---- 1x1 conv: (pixels, C) @ (C, Cout) on the MXU, + BN shift ----------
    # TODO(synk): for production channel counts, cast the dot operands to
    # bfloat16 (kept f32 here to match the f32 reference within 1e-4).
    y2 = jnp.dot(y.reshape(tHo * Wo, C), w_pw_ref[...],
                 preferred_element_type=jnp.float32)
    y2 = y2 + sh_pw_ref[...]

    o_ref[0] = y2.reshape(tHo, Wo, -1).astype(o_ref.dtype)


def _pick_row_tile(Ho, Wo, C, itemsize=4, budget=1 << 20):
    """Largest divisor of Ho whose f32 band accumulator fits the budget."""
    divisors = [d for d in range(1, Ho + 1) if Ho % d == 0]
    fitting = [d for d in divisors if d * Wo * C * itemsize <= budget]
    t = max(fitting) if fitting else 1
    # Prefer >=2 bands per image so there are enough grid steps to pipeline
    # write-back and shard across both v7x TensorCores.
    if t == Ho and Ho >= 16:
        smaller = [d for d in divisors if d < Ho]
        if smaller:
            t = max(smaller)
    return t


# ---------------------------------------------------------------------------
# Wrapper
# ---------------------------------------------------------------------------
def sep_conv2d(x_nchw, params, *, kernel_size, stride):
    K, s = kernel_size, stride
    pad = K // 2
    N, C, H, W = x_nchw.shape
    Cout = params["w_pw"].shape[1]

    # Fold BN scale into the conv weights; kernels only apply the shift.
    w_dw = params["w_dw"] * params["scale_dw"][None, None, :]   # (K, K, C)
    w_pw = params["w_pw"] * params["scale_pw"][None, :]         # (C, Cout)
    sh_dw = params["shift_dw"].reshape(1, C)                    # lane-major 2-D
    sh_pw = params["shift_pw"].reshape(1, Cout)

    # NCHW -> NHWC (channels on lanes) + zero halo (glue).
    # TODO(synk): fold the pad (and transpose) into the kernel via masked edge
    # handling to save one input-sized HBM round trip.
    x = jnp.transpose(x_nchw, (0, 2, 3, 1))
    x = jnp.pad(x, ((0, 0), (pad, pad), (pad, pad), (0, 0)))
    Hp, Wp = H + 2 * pad, W + 2 * pad
    Ho = (Hp - K) // s + 1
    Wo = (Wp - K) // s + 1

    tHo = _pick_row_tile(Ho, Wo, C)
    nH = Ho // tHo

    # NOTE: with the demo's C=4 / Cout=8, lane occupancy is inherently low;
    # real MnasNet channel counts (>=32) fill the 128-wide lanes.
    # TODO(synk): for very large H*W*C activations, switch the input to
    # memory_space=pl.ANY + manual halo-band DMA instead of a whole-image block.
    kernel = functools.partial(_sepconv_kernel, K=K, stride=s, tHo=tHo, Wo=Wo)
    out_nhwc = pl.pallas_call(
        kernel,
        out_shape=jax.ShapeDtypeStruct((N, Ho, Wo, Cout), x_nchw.dtype),
        grid=(N, nH),
        in_specs=[
            # whole padded image; block index constant along the band axis, so
            # it is DMA'd once per image and re-used across row bands.
            pl.BlockSpec((1, Hp, Wp, C), lambda n, h: (n, 0, 0, 0)),
            pl.BlockSpec((K, K, C), lambda n, h: (0, 0, 0)),
            pl.BlockSpec((1, C), lambda n, h: (0, 0)),
            pl.BlockSpec((C, Cout), lambda n, h: (0, 0)),
            pl.BlockSpec((1, Cout), lambda n, h: (0, 0)),
        ],
        out_specs=pl.BlockSpec((1, tHo, Wo, Cout), lambda n, h: (n, h, 0, 0)),
        compiler_params=pltpu.CompilerParams(
            dimension_semantics=("parallel", "parallel")),
    )(x, w_dw, sh_dw, w_pw, sh_pw)

    return jnp.transpose(out_nhwc, (0, 3, 1, 2))                # back to NCHW


# ---------------------------------------------------------------------------
# Parameter construction (deterministic, mirrors the PyTorch __init__)
# ---------------------------------------------------------------------------
def init_params(key, in_channels, out_channels, kernel_size):
    K = kernel_size
    k_dw, k_pw = jax.random.split(key)

    # kaiming_uniform_(mode='fan_in', nonlinearity='relu'):
    #   bound = sqrt(2) * sqrt(3 / fan_in)
    fan_in_dw = 1 * K * K                 # groups == in_channels -> 1 in-chan/group
    bound_dw = (2.0 ** 0.5) * (3.0 / fan_in_dw) ** 0.5
    w_dw = jax.random.uniform(k_dw, (K, K, in_channels),
                              minval=-bound_dw, maxval=bound_dw,
                              dtype=jnp.float32)
    b_dw = jnp.zeros((in_channels,), jnp.float32)

    fan_in_pw = in_channels
    bound_pw = (2.0 ** 0.5) * (3.0 / fan_in_pw) ** 0.5
    w_pw = jax.random.uniform(k_pw, (in_channels, out_channels),
                              minval=-bound_pw, maxval=bound_pw,
                              dtype=jnp.float32)
    b_pw = jnp.zeros((out_channels,), jnp.float32)

    # BatchNorm (eval): gamma=1, beta=0, running_mean=0, running_var=1.
    def fold_bn(conv_bias, n_ch):
        gamma = jnp.ones((n_ch,), jnp.float32)
        beta = jnp.zeros((n_ch,), jnp.float32)
        mean = jnp.zeros((n_ch,), jnp.float32)
        var = jnp.ones((n_ch,), jnp.float32)
        scale = gamma / jnp.sqrt(var + BN_EPS)
        shift = (conv_bias - mean) * scale + beta
        return scale, shift

    scale_dw, shift_dw = fold_bn(b_dw, in_channels)
    scale_pw, shift_pw = fold_bn(b_pw, out_channels)

    return {
        "w_dw": w_dw, "scale_dw": scale_dw, "shift_dw": shift_dw,
        "w_pw": w_pw, "scale_pw": scale_pw, "shift_pw": shift_pw,
    }


# ---------------------------------------------------------------------------
# Plain-JAX reference for validation
# ---------------------------------------------------------------------------
def reference(x_nchw, params, *, kernel_size, stride):
    K, s = kernel_size, stride
    pad = K // 2
    x = jnp.transpose(x_nchw, (0, 2, 3, 1))
    C = x.shape[-1]
    # Depthwise conv: rhs is HWIO with I = lhs_C / feature_group_count = 1,
    # O = C  ->  shape (K, K, 1, C).
    w = params["w_dw"][:, :, None, :]
    y = jax.lax.conv_general_dilated(
        x, w, window_strides=(s, s), padding=[(pad, pad), (pad, pad)],
        dimension_numbers=("NHWC", "HWIO", "NHWC"), feature_group_count=C)
    y = y * params["scale_dw"] + params["shift_dw"]
    y = jnp.clip(y, 0.0, 6.0)
    y = jnp.dot(y, params["w_pw"]) * params["scale_pw"] + params["shift_pw"]
    return jnp.transpose(y, (0, 3, 1, 2))


if __name__ == "__main__":
    key = jax.random.PRNGKey(0)
    k_x, k_p = jax.random.split(key)

    N, Cin, Cout, H, W = 2, 4, 8, 16, 16
    kernel_size, stride = 3, 1

    x = jax.random.normal(k_x, (N, Cin, H, W), dtype=jnp.float32)
    params = init_params(k_p, Cin, Cout, kernel_size)

    out = sep_conv2d(x, params, kernel_size=kernel_size, stride=stride)
    out = jax.block_until_ready(out)

    ref = reference(x, params, kernel_size=kernel_size, stride=stride)
    assert out.shape == (N, Cout, H // stride, W // stride), out.shape
    assert jnp.allclose(out, ref, atol=1e-4, rtol=1e-4), \
        float(jnp.max(jnp.abs(out - ref)))

    print("KERNEL_OK")
</pallas_src>

<mosaic_0001>
module attributes {stable_mosaic.version = 11 : i64} {
  func.func @_sepconv_kernel(%arg0: i32, %arg1: i32, %arg2: memref<1x18x18x4xf32, #tpu.memory_space<vmem>>, %arg3: memref<3x3x4xf32, #tpu.memory_space<vmem>>, %arg4: memref<1x4xf32, #tpu.memory_space<vmem>>, %arg5: memref<4x8xf32, #tpu.memory_space<vmem>>, %arg6: memref<1x8xf32, #tpu.memory_space<vmem>>, %arg7: memref<1x8x16x8xf32, #tpu.memory_space<vmem>>) attributes {dimension_semantics = [#tpu.dimension_semantics<parallel>, #tpu.dimension_semantics<parallel>], iteration_bounds = array<i64: 2, 2>, scalar_prefetch = 0 : i64, scratch_operands = 0 : i64, tpu.core_type = #tpu.core_type<tc>, window_params = [{transform_indices = @transform_0, window_bounds = array<i64: 1, 18, 18, 4>}, {pipeline_mode = #tpu.pipeline_mode<synchronous>, transform_indices = @transform_1, window_bounds = array<i64: 3, 3, 4>}, {pipeline_mode = #tpu.pipeline_mode<synchronous>, transform_indices = @transform_2, window_bounds = array<i64: 1, 4>}, {pipeline_mode = #tpu.pipeline_mode<synchronous>, transform_indices = @transform_3, window_bounds = array<i64: 4, 8>}, {pipeline_mode = #tpu.pipeline_mode<synchronous>, transform_indices = @transform_4, window_bounds = array<i64: 1, 8>}, {transform_indices = @transform_5, window_bounds = array<i64: 1, 8, 16, 8>}]} {
    %c8_i32 = arith.constant 8 : i32
    %0 = arith.muli %arg1, %c8_i32 : i32
    %1 = tpu.assume_multiple %0, 8 : i32
    %c0 = arith.constant 0 : index
    %2 = arith.index_cast %1 : i32 to index
    %c0_0 = arith.constant 0 : index
    %c0_1 = arith.constant 0 : index
    %3 = vector.load %arg2[%c0, %2, %c0_0, %c0_1] : memref<1x18x18x4xf32, #tpu.memory_space<vmem>>, vector<1x10x18x4xf32>
    %4 = vector.shape_cast %3 : vector<1x10x18x4xf32> to vector<10x18x4xf32>
    %c0_2 = arith.constant 0 : index
    %c0_3 = arith.constant 0 : index
    %c0_4 = arith.constant 0 : index
    %5 = vector.load %arg3[%c0_2, %c0_3, %c0_4] : memref<3x3x4xf32, #tpu.memory_space<vmem>>, vector<3x3x4xf32>
    %cst = arith.constant 0.000000e+00 : f32
    %6 = vector.broadcast %cst : f32 to vector<8x16x4xf32>
    %7 = vector.extract_strided_slice %4 {offsets = [0, 0, 0], sizes = [8, 16, 4], strides = [1, 1, 1]} : vector<10x18x4xf32> to vector<8x16x4xf32>
    %8 = vector.extract_strided_slice %5 {offsets = [0, 0, 0], sizes = [1, 1, 4], strides = [1, 1, 1]} : vector<3x3x4xf32> to vector<1x1x4xf32>
    %9 = vector.shape_cast %8 : vector<1x1x4xf32> to vector<4xf32>
    %10 = vector.shape_cast %9 : vector<4xf32> to vector<1x1x4xf32>
    %11 = vector.broadcast %10 : vector<1x1x4xf32> to vector<8x16x4xf32>
    %12 = arith.mulf %7, %11 : vector<8x16x4xf32>
    %13 = arith.addf %6, %12 : vector<8x16x4xf32>
    %14 = vector.extract_strided_slice %4 {offsets = [0, 1, 0], sizes = [8, 16, 4], strides = [1, 1, 1]} : vector<10x18x4xf32> to vector<8x16x4xf32>
    %15 = vector.extract_strided_slice %5 {offsets = [0, 1, 0], sizes = [1, 1, 4], strides = [1, 1, 1]} : vector<3x3x4xf32> to vector<1x1x4xf32>
    %16 = vector.shape_cast %15 : vector<1x1x4xf32> to vector<4xf32>
    %17 = vector.shape_cast %16 : vector<4xf32> to vector<1x1x4xf32>
    %18 = vector.broadcast %17 : vector<1x1x4xf32> to vector<8x16x4xf32>
    %19 = arith.mulf %14, %18 : vector<8x16x4xf32>
    %20 = arith.addf %13, %19 : vector<8x16x4xf32>
    %21 = vector.extract_strided_slice %4 {offsets = [0, 2, 0], sizes = [8, 16, 4], strides = [1, 1, 1]} : vector<10x18x4xf32> to vector<8x16x4xf32>
    %22 = vector.extract_strided_slice %5 {offsets = [0, 2, 0], sizes = [1, 1, 4], strides = [1, 1, 1]} : vector<3x3x4xf32> to vector<1x1x4xf32>
    %23 = vector.shape_cast %22 : vector<1x1x4xf32> to vector<4xf32>
    %24 = vector.shape_cast %23 : vector<4xf32> to vector<1x1x4xf32>
    %25 = vector.broadcast %24 : vector<1x1x4xf32> to vector<8x16x4xf32>
    %26 = arith.mulf %21, %25 : vector<8x16x4xf32>
    %27 = arith.addf %20, %26 : vector<8x16x4xf32>
    %28 = vector.extract_strided_slice %4 {offsets = [1, 0, 0], sizes = [8, 16, 4], strides = [1, 1, 1]} : vector<10x18x4xf32> to vector<8x16x4xf32>
    %29 = vector.extract_strided_slice %5 {offsets = [1, 0, 0], sizes = [1, 1, 4], strides = [1, 1, 1]} : vector<3x3x4xf32> to vector<1x1x4xf32>
    %30 = vector.shape_cast %29 : vector<1x1x4xf32> to vector<4xf32>
    %31 = vector.shape_cast %30 : vector<4xf32> to vector<1x1x4xf32>
    %32 = vector.broadcast %31 : vector<1x1x4xf32> to vector<8x16x4xf32>
    %33 = arith.mulf %28, %32 : vector<8x16x4xf32>
    %34 = arith.addf %27, %33 : vector<8x16x4xf32>
    %35 = vector.extract_strided_slice %4 {offsets = [1, 1, 0], sizes = [8, 16, 4], strides = [1, 1, 1]} : vector<10x18x4xf32> to vector<8x16x4xf32>
    %36 = vector.extract_strided_slice %5 {offsets = [1, 1, 0], sizes = [1, 1, 4], strides = [1, 1, 1]} : vector<3x3x4xf32> to vector<1x1x4xf32>
    %37 = vector.shape_cast %36 : vector<1x1x4xf32> to vector<4xf32>
    %38 = vector.shape_cast %37 : vector<4xf32> to vector<1x1x4xf32>
    %39 = vector.broadcast %38 : vector<1x1x4xf32> to vector<8x16x4xf32>
    %40 = arith.mulf %35, %39 : vector<8x16x4xf32>
    %41 = arith.addf %34, %40 : vector<8x16x4xf32>
    %42 = vector.extract_strided_slice %4 {offsets = [1, 2, 0], sizes = [8, 16, 4], strides = [1, 1, 1]} : vector<10x18x4xf32> to vector<8x16x4xf32>
    %43 = vector.extract_strided_slice %5 {offsets = [1, 2, 0], sizes = [1, 1, 4], strides = [1, 1, 1]} : vector<3x3x4xf32> to vector<1x1x4xf32>
    %44 = vector.shape_cast %43 : vector<1x1x4xf32> to vector<4xf32>
    %45 = vector.shape_cast %44 : vector<4xf32> to vector<1x1x4xf32>
    %46 = vector.broadcast %45 : vector<1x1x4xf32> to vector<8x16x4xf32>
    %47 = arith.mulf %42, %46 : vector<8x16x4xf32>
    %48 = arith.addf %41, %47 : vector<8x16x4xf32>
    %49 = vector.extract_strided_slice %4 {offsets = [2, 0, 0], sizes = [8, 16, 4], strides = [1, 1, 1]} : vector<10x18x4xf32> to vector<8x16x4xf32>
    %50 = vector.extract_strided_slice %5 {offsets = [2, 0, 0], sizes = [1, 1, 4], strides = [1, 1, 1]} : vector<3x3x4xf32> to vector<1x1x4xf32>
    %51 = vector.shape_cast %50 : vector<1x1x4xf32> to vector<4xf32>
    %52 = vector.shape_cast %51 : vector<4xf32> to vector<1x1x4xf32>
    %53 = vector.broadcast %52 : vector<1x1x4xf32> to vector<8x16x4xf32>
    %54 = arith.mulf %49, %53 : vector<8x16x4xf32>
    %55 = arith.addf %48, %54 : vector<8x16x4xf32>
    %56 = vector.extract_strided_slice %4 {offsets = [2, 1, 0], sizes = [8, 16, 4], strides = [1, 1, 1]} : vector<10x18x4xf32> to vector<8x16x4xf32>
    %57 = vector.extract_strided_slice %5 {offsets = [2, 1, 0], sizes = [1, 1, 4], strides = [1, 1, 1]} : vector<3x3x4xf32> to vector<1x1x4xf32>
    %58 = vector.shape_cast %57 : vector<1x1x4xf32> to vector<4xf32>
    %59 = vector.shape_cast %58 : vector<4xf32> to vector<1x1x4xf32>
    %60 = vector.broadcast %59 : vector<1x1x4xf32> to vector<8x16x4xf32>
    %61 = arith.mulf %56, %60 : vector<8x16x4xf32>
    %62 = arith.addf %55, %61 : vector<8x16x4xf32>
    %63 = vector.extract_strided_slice %4 {offsets = [2, 2, 0], sizes = [8, 16, 4], strides = [1, 1, 1]} : vector<10x18x4xf32> to vector<8x16x4xf32>
    %64 = vector.extract_strided_slice %5 {offsets = [2, 2, 0], sizes = [1, 1, 4], strides = [1, 1, 1]} : vector<3x3x4xf32> to vector<1x1x4xf32>
    %65 = vector.shape_cast %64 : vector<1x1x4xf32> to vector<4xf32>
    %66 = vector.shape_cast %65 : vector<4xf32> to vector<1x1x4xf32>
    %67 = vector.broadcast %66 : vector<1x1x4xf32> to vector<8x16x4xf32>
    %68 = arith.mulf %63, %67 : vector<8x16x4xf32>
    %69 = arith.addf %62, %68 : vector<8x16x4xf32>
    %c0_5 = arith.constant 0 : index
    %c0_6 = arith.constant 0 : index
    %70 = vector.load %arg4[%c0_5, %c0_6] : memref<1x4xf32, #tpu.memory_space<vmem>>, vector<1x4xf32>
    %71 = vector.shape_cast %70 : vector<1x4xf32> to vector<1x1x4xf32>
    %72 = vector.broadcast %71 : vector<1x1x4xf32> to vector<8x16x4xf32>
    %73 = arith.addf %69, %72 : vector<8x16x4xf32>
    %cst_7 = arith.constant 0.000000e+00 : f32
    %cst_8 = arith.constant 6.000000e+00 : f32
    %74 = vector.broadcast %cst_7 : f32 to vector<8x16x4xf32>
    %75 = arith.maximumf %74, %73 : vector<8x16x4xf32>
    %76 = vector.broadcast %cst_8 : f32 to vector<8x16x4xf32>
    %77 = arith.minimumf %76, %75 : vector<8x16x4xf32>
    %78 = vector.shape_cast %77 : vector<8x16x4xf32> to vector<128x4xf32>
    %c0_9 = arith.constant 0 : index
    %c0_10 = arith.constant 0 : index
    %79 = vector.load %arg5[%c0_9, %c0_10] : memref<4x8xf32, #tpu.memory_space<vmem>>, vector<4x8xf32>
    %cst_11 = arith.constant dense<0.000000e+00> : vector<128x8xf32>
    %80 = tpu.matmul %78, %79, %cst_11 {dimension_numbers = #tpu.dot_dimension_numbers<[1], [0], [0], [1], [0, 0, 1, 1], [], []>} : vector<128x4xf32>, vector<4x8xf32>, vector<128x8xf32> -> vector<128x8xf32>
    %c0_12 = arith.constant 0 : index
    %c0_13 = arith.constant 0 : index
    %81 = vector.load %arg6[%c0_12, %c0_13] : memref<1x8xf32, #tpu.memory_space<vmem>>, vector<1x8xf32>
    %82 = vector.broadcast %81 : vector<1x8xf32> to vector<128x8xf32>
    %83 = arith.addf %80, %82 : vector<128x8xf32>
    %84 = vector.shape_cast %83 : vector<128x8xf32> to vector<8x16x8xf32>
    %c0_14 = arith.constant 0 : index
    %c0_15 = arith.constant 0 : index
    %c0_16 = arith.constant 0 : index
    %c0_17 = arith.constant 0 : index
    %85 = vector.load %arg7[%c0_14, %c0_15, %c0_16, %c0_17] : memref<1x8x16x8xf32, #tpu.memory_space<vmem>>, vector<1x8x16x8xf32>
    %86 = vector.shape_cast %85 : vector<1x8x16x8xf32> to vector<8x16x8xf32>
    %87 = vector.shape_cast %84 : vector<8x16x8xf32> to vector<1x8x16x8xf32>
    tpu.vector_store %arg7[%c0_14, %c0_15, %c0_16, %c0_17], %87 {strides = array<i32>} : memref<1x8x16x8xf32, #tpu.memory_space<vmem>>, vector<1x8x16x8xf32>,
    return
  }
  func.func @transform_0(%arg0: i32, %arg1: i32) -> (i32, i32, i32, i32) {
    %c0_i32 = arith.constant 0 : i32
    %c0_i32_0 = arith.constant 0 : i32
    %c0_i32_1 = arith.constant 0 : i32
    %c0_i32_2 = arith.constant 0 : i32
    return %arg0, %c0_i32, %c0_i32_0, %c0_i32_1 : i32, i32, i32, i32
  }
  func.func @transform_1(%arg0: i32, %arg1: i32) -> (i32, i32, i32) {
    %c0_i32 = arith.constant 0 : i32
    %c0_i32_0 = arith.constant 0 : i32
    %c0_i32_1 = arith.constant 0 : i32
    %c0_i32_2 = arith.constant 0 : i32
    return %c0_i32, %c0_i32_0, %c0_i32_1 : i32, i32, i32
  }
  func.func @transform_2(%arg0: i32, %arg1: i32) -> (i32, i32) {
    %c0_i32 = arith.constant 0 : i32
    %c0_i32_0 = arith.constant 0 : i32
    %c0_i32_1 = arith.constant 0 : i32
    return %c0_i32, %c0_i32_0 : i32, i32
  }
  func.func @transform_3(%arg0: i32, %arg1: i32) -> (i32, i32) {
    %c0_i32 = arith.constant 0 : i32
    %c0_i32_0 = arith.constant 0 : i32
    %c0_i32_1 = arith.constant 0 : i32
    return %c0_i32, %c0_i32_0 : i32, i32
  }
  func.func @transform_4(%arg0: i32, %arg1: i32) -> (i32, i32) {
    %c0_i32 = arith.constant 0 : i32
    %c0_i32_0 = arith.constant 0 : i32
    %c0_i32_1 = arith.constant 0 : i32
    return %c0_i32, %c0_i32_0 : i32, i32
  }
  func.func @transform_5(%arg0: i32, %arg1: i32) -> (i32, i32, i32, i32) {
    %c0_i32 = arith.constant 0 : i32
    %c0_i32_0 = arith.constant 0 : i32
    %c0_i32_1 = arith.constant 0 : i32
    return %arg0, %arg1, %c0_i32, %c0_i32_0 : i32, i32, i32, i32
  }
}

</mosaic_0001>

<bundles_post_ra>
// kernel: tpu_custom_call.1
= control target key start
LH: loop header
LB: loop body
LE: loop exit
PB: predicated region body
PF: predicated region fallthrough
CT: control target
= control target key end

     0   :  { %s1702_s18 = smov 0   ;;  %s1704_s19 = smov 0   ;;  %s2755_s0 = inlined_call_operand.vmem [shape: f32[2,18,18,4], index: 0, kind: input, shape index: {}]   ;;  %s2756_s1 = inlined_call_operand.vmem [shape: f32[3,3,4], index: 1, kind: input, shape index: {}]   ;;  %s2757_s2 = inlined_call_operand.vmem [shape: f32[1,4], index: 2, kind: input, shape index: {}]   ;;  %s2758_s3 = inlined_call_operand.vmem [shape: f32[4,8], index: 3, kind: input, shape index: {}]   ;;  %s2759_s4 = inlined_call_operand.vmem [shape: f32[1,8], index: 4, kind: input, shape index: {}]   ;;  %s2760_s5 = inlined_call_operand.vmem [shape: f32[2,16,16,8], index: 5, kind: output, shape index: {}]  }
   0x1   :  { %s1706_s20 = smov 0   ;;  %s1708_s21 = smov 0  }
   0x2   :  { %s1710_s22 = smov 0  }
   0x3 LB: > { %s24_s23 = sadd.s32 1, %s1662_s20  ;;  %s27_s24 = sadd.s32 1, %s1666_s21  ;;  %s1670_s22 = sphi %s1710_s22, %s15_s22   ;;  %s1666_s21 = sphi %s1708_s21, %s2796_s21   ;;  %s1662_s20 = sphi %s1706_s20, %s2795_s20   ;;  %s1658_s19 = sphi %s1704_s19, %s2794_s19   ;;  %s1654_s18 = sphi %s1702_s18, %s2793_s18  }
   0x4   : > { %p25_p0 = scmp.ge.s32.totalorder %s24_s23, 2  ;;  %p1514_p1 = scmp.ge.s32.totalorder %s1670_s22, 1 }
   0x5   : > { %p201_p2 = scmp.lt.s32.totalorder %s1670_s22, 5 }
   0x6   : > { %s2798_s23 = smov (%p25_p0, %s24_s23), 0  ;;  %s2800_s24 = smov (!%p25_p0, %s27_s24), %s1666_s21 }
   0x7   : > { %p202_p3 = pnand %p1514_p1, %p201_p2  ;;  %p29_p4 = scmp.ge.s32.totalorder %s2800_s24, 2 }
   0x8   : > { %v1195_v0 = vld [vmem:[%s2758_s3] sm:$0xf] (!%p202_p3)  ;;  %vm1252_vm0 = vcmask (!%p202_p3), 1043456   ;;  %p234_p5 = scmp.lt.s32.totalorder (!%p202_p3), %s1658_s19, 1  ;;  %v286_v1 = vlaneseq (!%p202_p3)  ;;  %s1521_s27 = smul.u32 (!%p202_p3), 192, %s1654_s18  ;;  %vm374_vm1 = vcmask (!%p202_p3), 1046528  }
   0x9   : > { %s2802_s24 = smov (%p29_p4, %s2800_s24), 0  ;;  %205 = sbr.rel (%p202_p3) target bundleno = 407 (0x197), region = 40 }
   0xa   : > { %1560 = vmatprep.subr.msk.mxu0 (!%p202_p3), %vm1252_vm0, %v1195_v0  ;;  %1586 = vmatprep.subr.msk.mxu1 (!%p202_p3), %vm1252_vm0, %v1195_v0  ;;  %v287_v2 = vshrl.u32 (!%p202_p3), %v286_v1, 7  ;;  %v283_v3 = vld [vmem:[%s2756_s1] sm:$0x7] (!%p202_p3)  ;;  %v284_v4 = vld [vmem:[%s2756_s1 + $0x4] sm:$0x7] (!%p202_p3)  ;;  %vm499_vm2 = vcmask (!%p202_p3), 1045504  }
   0xb   : > { %1561 = vmatpush3.msk.msra.mxu0 (!%p202_p3), %vm1252_vm0, %v1195_v0  ;;  %1587 = vmatpush3.msk.msra.mxu1 (!%p202_p3), %vm1252_vm0, %v1195_v0  ;;  %v285_v8 = vld [vmem:[%s2756_s1 + $0x8] sm:$0x7] (!%p202_p3)  ;;  %vm1203_vm3 = vcmask (!%p202_p3), 31744   ;;  %s1516_s25 = sshll.u32 (!%p202_p3), %s1654_s18, 3  ;;  %vm1401_vm4 = vcmask (!%p202_p3), 64512  }
   0xc   : > { %v288_v5 = vsub.s32 (!%p202_p3), 0, %v287_v2  ;;  %v324_v6 = vsub.s32 (!%p202_p3), 1, %v287_v2  ;;  %v449_v7 = vsub.s32 (!%p202_p3), 2, %v287_v2  ;;  %p242_p6 = scmp.lt.s32.totalorder (!%p202_p3), %s1516_s25, 15 }
   0xe   : > { %v1753_v9 = vrot.slane (!%p202_p3), %v283_v3, %v288_v5  ;;  %v1755_v10 = vrot.slane (!%p202_p3), %v283_v3, %v324_v6  ;;  %v1757_v11 = vrot.slane (!%p202_p3), %v283_v3, %v449_v7  ;;  %v1759_v12 = vrot.slane (!%p202_p3), %v284_v4, %v288_v5 }
   0xf   : > { %v1763_v13 = vrot.slane (!%p202_p3), %v284_v4, %v324_v6  ;;  %v1765_v14 = vrot.slane (!%p202_p3), %v284_v4, %v449_v7  ;;  %v1771_v17 = vrot.slane (!%p202_p3), %v285_v8, %v288_v5  ;;  %v1773_v18 = vrot.slane (!%p202_p3), %v285_v8, %v324_v6 }
  0x10   : > { %s2804_s19 = smov (!%p234_p5, %s1658_s19), 1  ;;  %v1775_v19 = vrot.slane %v285_v8, %v449_v7  ;;  %s2806_s25 = smov (!%p242_p6, %s1516_s25), 15 }
  0x11   : > { %s1588_s7 = smul.u32 432, %s2804_s19  ;;  %s1517_s26 = sshll.u32 %s2806_s25, 1 }
  0x13   : > { %s238_s12 = scalar_lea.vmem %s2755_s0, %s1588_s7 }
  0x14   : > { %s1761_s13 = scalar_lea.vmem %s238_s12, %s1521_s27  ;;  %s1518_s27 = sshll.u32 %s2804_s19, 5 }
  0x15   : > { %v253_v15 = vld [vmem:[%s1761_s13] sm:$0xff]  ;;  %v1769_v16 = vld [vmem:[%s1761_s13 + $0x8] sm:$0xff]  ;;  %v1778_v20 = vld [vmem:[%s1761_s13 + $0x18] sm:$0xff]  ;;  %s246_s28 = sadd.s32 %s1518_s27, %s1517_s26 }
  0x16   : > { %v1781_v21 = vld [vmem:[%s1761_s13 + $0x20] sm:$0xff]  ;;  %v290_v22 = vmul.f32 %v1753_v9, %v253_v15  ;;  %v326_v23 = vmul.f32 %v1755_v10, %v253_v15  ;;  %v1787_v24 = vmul.f32 %v1755_v10, %v1769_v16  ;;  %v451_v25 = vmul.f32 %v1757_v11, %v253_v15  ;;  %v1806_v34 = vld [vmem:[%s1761_s13 + $0x30] sm:$0xff]  ;;  %v1825_v44 = vld [vmem:[%s1761_s13 + $0x38] sm:$0xff]  ;;  %s1519_s29 = sshll.u32 %s246_s28, 3 }
  0x17   : > { %v1792_v26 = vmul.f32 %v1757_v11, %v1769_v16  ;;  %v576_v27 = vmul.f32 %v1759_v12, %v1778_v20  ;;  %v612_v28 = vmul.f32 %v1763_v13, %v1778_v20  ;;  %v1800_v29 = vmul.f32 %v1763_v13, %v1781_v21  ;;  %v1822_v43 = vld [vmem:[%s1761_s13 + $0x60] sm:$0xff]  ;;  %v1835_v49 = vld [vmem:[%s1761_s13 + $0x68] sm:$0xff]  ;;  %v1861_v63 = vld [vmem:[%s1761_s13 + $0x78] sm:$0xff]  ;;  %s2706_s9 = scalar_lea.vmem %s2760_s5, %s1519_s29 }
  0x18   : > { %v375_v30 = vrot.slane %v326_v23, 1  ;;  %v376_v31 = vrot.slane %v1787_v24, 1  ;;  %v500_v32 = vrot.slane %v451_v25, 2  ;;  %v736_v33 = vmul.f32 %v1765_v14, %v1778_v20  ;;  %v1879_v8 = vld [vmem:[%s1761_s13 + $0x80] sm:$0xff] }
  0x19   : > { %v501_v35 = vrot.slane %v1792_v26, 2  ;;  %v660_v36 = vrot.slane %v612_v28, 1  ;;  %v661_v37 = vrot.slane %v1800_v29, 1  ;;  %v1812_v38 = vmul.f32 %v1765_v14, %v1781_v21 }
  0x1a   : > { %v377_v39 = vsel %vm374_vm1, %v375_v30, %v376_v31  ;;  %v784_v40 = vrot.slane %v736_v33, 2  ;;  %v860_v41 = vmul.f32 %v1771_v17, %v1806_v34  ;;  %v896_v42 = vmul.f32 %v1773_v18, %v1806_v34  ;;  %v1898_v33 = vld [vmem:[%s1761_s13 + $0x90] sm:$0xff] }
  0x1b   : > { %v431_v45 = vadd.f32 %v377_v39, %v290_v22  ;;  %v502_v46 = vsel %vm499_vm2, %v500_v32, %v501_v35  ;;  %v662_v47 = vsel %vm374_vm1, %v660_v36, %v661_v37  ;;  %v785_v48 = vrot.slane %v1812_v38, 2 }
  0x1c   : > { %v1839_v50 = vmul.f32 %v1773_v18, %v1825_v44  ;;  %v944_v51 = vrot.slane %v896_v42, 1  ;;  %v1020_v52 = vmul.f32 %v1775_v19, %v1806_v34  ;;  %v1845_v53 = vmul.f32 %v1775_v19, %v1825_v44  ;;  %v1904_v42 = vld [vmem:[%s1761_s13 + $0x98] sm:$0xff] }
  0x1d   : > { %v556_v54 = vadd.f32 %v502_v46, %v431_v45  ;;  %v786_v55 = vsel %vm499_vm2, %v784_v40, %v785_v48  ;;  %v298_v56 = vmul.f32 %v1753_v9, %v1822_v43  ;;  %v338_v57 = vmul.f32 %v1755_v10, %v1822_v43 }
  0x1e   : > { %v945_v58 = vrot.slane %v1839_v50, 1  ;;  %v1068_v59 = vrot.slane %v1020_v52, 2  ;;  %v1069_v60 = vrot.slane %v1845_v53, 2  ;;  %v1858_v61 = vmul.f32 %v1755_v10, %v1835_v49 }
  0x1f   : > { %v592_v62 = vadd.f32 %v576_v27, %v556_v54  ;;  %v395_v0 = vrot.slane %v338_v57, 1  ;;  %v463_v1 = vmul.f32 %v1757_v11, %v1822_v43  ;;  %v1867_v2 = vmul.f32 %v1757_v11, %v1835_v49  ;;  %v255_v57 = vld [vmem:[%s1761_s13 + $0x10] sm:$0x3] }
  0x20   : > { %v946_v3 = vsel %vm374_vm1, %v944_v51, %v945_v58  ;;  %v1070_v4 = vsel %vm499_vm2, %v1068_v59, %v1069_v60  ;;  %v396_v5 = vrot.slane %v1858_v61, 1  ;;  %v584_v6 = vmul.f32 %v1759_v12, %v1861_v63 }
  0x21   : > { %v716_v7 = vadd.f32 %v662_v47, %v592_v62  ;;  %v520_v15 = vrot.slane %v463_v1, 2  ;;  %v521_v22 = vrot.slane %v1867_v2, 2  ;;  %v624_v23 = vmul.f32 %v1763_v13, %v1861_v63 }
  0x22   : > { %v397_v25 = vsel %vm374_vm1, %v395_v0, %v396_v5  ;;  %v1889_v27 = vmul.f32 %v1763_v13, %v1879_v8  ;;  %v748_v28 = vmul.f32 %v1765_v14, %v1861_v63  ;;  %v1895_v30 = vmul.f32 %v1765_v14, %v1879_v8 }
  0x23   : > { %v840_v32 = vadd.f32 %v786_v55, %v716_v7  ;;  %v439_v36 = vadd.f32 %v397_v25, %v298_v56  ;;  %v522_v39 = vsel %vm499_vm2, %v520_v15, %v521_v22  ;;  %v680_v40 = vrot.slane %v624_v23, 1  ;;  %v1933_v25 = vld [vmem:[%s2757_s2] ss:$0 sm:$0xff] }
  0x24   : > { %v681_v45 = vrot.slane %v1889_v27, 1  ;;  %v804_v46 = vrot.slane %v748_v28, 2  ;;  %v2763_v47 = vrot.slane %v1895_v30, 2  ;;  %v868_v51 = vmul.f32 %v1771_v17, %v1898_v33 }
  0x25   : > { %v876_v52 = vadd.f32 %v860_v41, %v840_v32  ;;  %v564_v54 = vadd.f32 %v522_v39, %v439_v36  ;;  %v908_v55 = vmul.f32 %v1773_v18, %v1898_v33  ;;  %v1914_v56 = vmul.f32 %v1773_v18, %v1904_v42 }
  0x26   : > { %v682_v59 = vsel %vm374_vm1, %v680_v40, %v681_v45  ;;  %v806_v62 = vsel %vm499_vm2, %v804_v46, %v2763_v47  ;;  %v1032_v41 = vmul.f32 %v1775_v19, %v1898_v33  ;;  %v1927_v0 = vmul.f32 %v1775_v19, %v1904_v42  ;;  %v1943_v46 = vld [vmem:[%s1761_s13 + $0x28] sm:$0x3] }
  0x27   : > { %v1000_v1 = vadd.f32 %v946_v3, %v876_v52  ;;  %v600_v7 = vadd.f32 %v584_v6, %v564_v54  ;;  %v964_v15 = vrot.slane %v908_v55, 1  ;;  %v2762_v23 = vrot.slane %v1914_v56, 1 }
  0x28   : > { %v1088_v28 = vrot.slane %v1032_v41, 2  ;;  %v2761_v32 = vrot.slane %v1927_v0, 2  ;;  %v291_v36 = vmul.f32 %v1753_v9, %v1769_v16  ;;  %v328_v39 = vmul.f32 %v1755_v10, %v255_v57 }
  0x29   : > { %v1124_v40 = vadd.f32 %v1070_v4, %v1000_v1  ;;  %v724_v3 = vadd.f32 %v682_v59, %v600_v7  ;;  %v966_v6 = vsel %vm374_vm1, %v964_v15, %v2762_v23  ;;  %v453_v52 = vmul.f32 %v1757_v11, %v255_v57  ;;  %v1955_v1 = vld [vmem:[%s1761_s13 + $0x40] sm:$0x3] }
  0x2a   : > { %v1090_v54 = vsel %vm499_vm2, %v1088_v28, %v2761_v32  ;;  %v378_v55 = vrot.slane %v328_v39, 1  ;;  %v577_v16 = vmul.f32 %v1759_v12, %v1781_v21  ;;  %v614_v4 = vmul.f32 %v1763_v13, %v1943_v46 }
  0x2b   : > { %v1147_v59 = vadd.f32 %v1933_v25, %v1124_v40  ;;  %v848_v41 = vadd.f32 %v806_v62, %v724_v3  ;;  %v503_v7 = vrot.slane %v453_v52, 2  ;;  %v738_v57 = vmul.f32 %v1765_v14, %v1943_v46  ;;  %v1970_v52 = vld [vmem:[%s1761_s13 + $0x70] sm:$0x3] }
  0x2c   : > { %v379_v15 = vsel %vm374_vm1, %v376_v31, %v378_v55  ;;  %v663_v28 = vrot.slane %v614_v4, 1  ;;  %v861_v39 = vmul.f32 %v1771_v17, %v1825_v44  ;;  %v898_v32 = vmul.f32 %v1773_v18, %v1955_v1 }
  0x2d   : > { %v1163_v23 = vmax.f32 %v1147_v59, 0.0  ;;  %v884_v40 = vadd.f32 %v868_v51, %v848_v41  ;;  %v432_v62 = vadd.f32 %v379_v15, %v291_v36  ;;  %v504_v3 = vsel %vm499_vm2, %v501_v35, %v503_v7  ;;  %v2004_v7 = vld [vmem:[%s1761_s13 + $0xa0] sm:$0x3] }
  0x2e   : > { %v664_v24 = vsel %vm374_vm1, %v661_v37, %v663_v28  ;;  %v787_v31 = vrot.slane %v738_v57, 2  ;;  %v947_v55 = vrot.slane %v898_v32, 1  ;;  %v1022_v4 = vmul.f32 %v1775_v19, %v1955_v1 }
  0x2f   : > { %v1179_v47 = vmin.f32 %v1163_v23, 6.0  ;;  %v1008_v59 = vadd.f32 %v966_v6, %v884_v40  ;;  %v557_v51 = vadd.f32 %v504_v3, %v432_v62  ;;  %v299_v26 = vmul.f32 %v1753_v9, %v1835_v49  ;;  %v1989_v6 = vld [vmem:[%s1761_s13 + $0x88] sm:$0x3] }
  0x30   : > { %v788_v35 = vsel %vm499_vm2, %v785_v48, %v787_v31  ;;  %v948_v29 = vsel %vm374_vm1, %v945_v58, %v947_v55  ;;  %v1071_v37 = vrot.slane %v1022_v4, 2  ;;  %v340_v32 = vmul.f32 %v1755_v10, %v1970_v52 }
  0x31   : > { %1562 = vmatprep.mubr.msk.f32.mxu0 %vm1203_vm3, %v1179_v47  ;;  %v1132_v23 = vadd.f32 %v1090_v54, %v1008_v59  ;;  %v593_v36 = vadd.f32 %v577_v16, %v557_v51  ;;  %v465_v38 = vmul.f32 %v1757_v11, %v1970_v52  ;;  %v585_v48 = vmul.f32 %v1759_v12, %v1879_v8 }
  0x32   : > { %v1072_v50 = vsel %vm499_vm2, %v1069_v60, %v1071_v37  ;;  %v398_v58 = vrot.slane %v340_v32, 1  ;;  %v626_v41 = vmul.f32 %v1763_v13, %v1989_v6  ;;  %v750_v47 = vmul.f32 %v1765_v14, %v1989_v6 }
  0x33   : > { %v1155_v54 = vadd.f32 %v1933_v25, %v1132_v23  ;;  %v717_v16 = vadd.f32 %v664_v24, %v593_v36  ;;  %v523_v57 = vrot.slane %v465_v38, 2  ;;  %v869_v15 = vmul.f32 %v1771_v17, %v1904_v42 }
  0x34   : > { %v399_v53 = vsel %vm374_vm1, %v396_v5, %v398_v58  ;;  %v683_v60 = vrot.slane %v626_v41, 1  ;;  %v807_v28 = vrot.slane %v750_v47, 2  ;;  %v910_v40 = vmul.f32 %v1773_v18, %v2004_v7 }
  0x35   : > { %v1171_v62 = vmax.f32 %v1155_v54, 0.0  ;;  %v841_v3 = vadd.f32 %v788_v35, %v717_v16  ;;  %v440_v31 = vadd.f32 %v399_v53, %v299_v26  ;;  %v524_v24 = vsel %vm499_vm2, %v521_v22, %v523_v57 }
  0x36   : > { %v684_v55 = vsel %vm374_vm1, %v681_v45, %v683_v60  ;;  %v2777_v61 = vrot.slane %v1895_v30, 2  ;;  %v967_v4 = vrot.slane %v910_v40, 1  ;;  %v1034_v59 = vmul.f32 %v1775_v19, %v2004_v7 }
  0x37   : > { %v1187_v51 = vmin.f32 %v1171_v62, 6.0  ;;  %v877_v37 = vadd.f32 %v861_v39, %v841_v3  ;;  %v565_v35 = vadd.f32 %v524_v24, %v440_v31  ;;  %v292_v2 = vmul.f32 %v1753_v9, %v1778_v20  ;;  %v2065_v62 = vld [vmem:[%s1761_s13 + $0x48] sm:$0xff] }
  0x38   : > { %v808_v5 = vsel %vm499_vm2, %v2777_v61, %v807_v28  ;;  %v2778_v22 = vrot.slane %v1914_v56, 1  ;;  %v1091_v26 = vrot.slane %v1034_v59, 2  ;;  %v329_v30 = vmul.f32 %v1755_v10, %v1778_v20  ;;  %v2073_v59 = vld [vmem:[%s1761_s13 + $0x50] sm:$0xff] }
  0x39   : > { %v2033_v45 = vmul.f32 %v1755_v10, %v1781_v21  ;;  %1574 = vmatprep.mubr.msk.f32.mxu1 %vm1203_vm3, %v1187_v51  ;;  %v1001_v32 = vadd.f32 %v948_v29, %v877_v37  ;;  %v601_v39 = vadd.f32 %v585_v48, %v565_v35  ;;  %v454_v23 = vmul.f32 %v1757_v11, %v1778_v20 }
  0x3a   : > { %v968_v27 = vsel %vm374_vm1, %v2778_v22, %v967_v4  ;;  %v2040_v56 = vmul.f32 %v1757_v11, %v1781_v21  ;;  %v2779_v36 = vrot.slane %v1927_v0, 2  ;;  %v380_v58 = vrot.slane %v329_v30, 1 }
  0x3b   : > { %v381_v41 = vrot.slane %v2033_v45, 1  ;;  %v578_v47 = vmul.f32 %v1759_v12, %v1806_v34  ;;  %v1125_v29 = vadd.f32 %v1072_v50, %v1001_v32  ;;  %v725_v48 = vadd.f32 %v684_v55, %v601_v39 }
  0x3c   : > { %v1092_v38 = vsel %vm499_vm2, %v2779_v36, %v1091_v26  ;;  %v505_v54 = vrot.slane %v454_v23, 2  ;;  %v506_v20 = vrot.slane %v2040_v56, 2  ;;  %v615_v0 = vmul.f32 %v1763_v13, %v1806_v34 }
  0x3d   : > { %v382_v16 = vsel %vm374_vm1, %v380_v58, %v381_v41  ;;  %v2056_v57 = vmul.f32 %v1763_v13, %v1825_v44  ;;  %v739_v53 = vmul.f32 %v1765_v14, %v1806_v34  ;;  %v1148_v50 = vadd.f32 %v1933_v25, %v1125_v29 }
  0x3e   : > { %v849_v60 = vadd.f32 %v808_v5, %v725_v48  ;;  %v433_v28 = vadd.f32 %v382_v16, %v292_v2  ;;  %v507_v40 = vsel %vm499_vm2, %v505_v54, %v506_v20  ;;  %v665_v3 = vrot.slane %v615_v0, 1 }
  0x3f   : > { %v666_v31 = vrot.slane %v2056_v57, 1  ;;  %v2070_v24 = vmul.f32 %v1765_v14, %v1825_v44  ;;  %v789_v55 = vrot.slane %v739_v53, 2  ;;  %v1164_v61 = vmax.f32 %v1148_v50, 0.0 }
  0x40   : > { %v885_v4 = vadd.f32 %v869_v15, %v849_v60  ;;  %v558_v5 = vadd.f32 %v507_v40, %v433_v28  ;;  %v862_v51 = vmul.f32 %v1771_v17, %v2065_v62  ;;  %v899_v2 = vmul.f32 %v1773_v18, %v2065_v62 }
  0x41   : > { %v667_v37 = vsel %vm374_vm1, %v665_v3, %v666_v31  ;;  %v790_v35 = vrot.slane %v2070_v24, 2  ;;  %v2085_v22 = vmul.f32 %v1773_v18, %v2073_v59  ;;  %v1180_v15 = vmin.f32 %v1164_v61, 6.0 }
  0x42   : > { %v1009_v26 = vadd.f32 %v968_v27, %v885_v4  ;;  %v594_v30 = vadd.f32 %v578_v47, %v558_v5  ;;  %v1023_v32 = vmul.f32 %v1775_v19, %v2065_v62  ;;  %v949_v23 = vrot.slane %v899_v2, 1 }
  0x43   : > { %v791_v39 = vsel %vm499_vm2, %v789_v55, %v790_v35  ;;  %v2770_v36 = vrot.slane %v2085_v22, 1  ;;  %v2095_v58 = vmul.f32 %v1775_v19, %v2073_v59  ;;  %1563 = vmatmul.mubr.msk.f32.vlgmr.msra.gmra.mrb[0].mxu0 %vm1203_vm3, %v1180_v15  ;;  %v300_v47 = vmul.f32 %v1753_v9, %v1861_v63 }
  0x44   : > { %v1133_v29 = vadd.f32 %v1092_v38, %v1009_v26  ;;  %v718_v48 = vadd.f32 %v667_v37, %v594_v30  ;;  %v1073_v27 = vrot.slane %v1023_v32, 2  ;;  %v341_v0 = vmul.f32 %v1755_v10, %v1861_v63 }
  0x45   : > { %v951_v54 = vsel %vm374_vm1, %v949_v23, %v2770_v36  ;;  %v2768_v16 = vrot.slane %v2095_v58, 2  ;;  %v2108_v53 = vmul.f32 %v1755_v10, %v1879_v8  ;;  %v466_v60 = vmul.f32 %v1757_v11, %v1861_v63 }
  0x46   : > { %v1156_v38 = vadd.f32 %v1933_v25, %v1133_v29  ;;  %v842_v50 = vadd.f32 %v791_v39, %v718_v48  ;;  %v2115_v28 = vmul.f32 %v1757_v11, %v1879_v8  ;;  %v400_v3 = vrot.slane %v341_v0, 1  ;;  %v2139_v48 = vld [vmem:[%s1761_s13 + $0xa8] sm:$0xff] }
  0x47   : > { %v1075_v40 = vsel %vm499_vm2, %v1073_v27, %v2768_v16  ;;  %v2766_v55 = vrot.slane %v2108_v53, 1  ;;  %v586_v61 = vmul.f32 %v1759_v12, %v1898_v33  ;;  %v525_v37 = vrot.slane %v466_v60, 2 }
  0x48   : > { %v1172_v4 = vmax.f32 %v1156_v38, 0.0  ;;  %v878_v5 = vadd.f32 %v862_v51, %v842_v50  ;;  %v2765_v2 = vrot.slane %v2115_v28, 2  ;;  %v627_v26 = vmul.f32 %v1763_v13, %v1898_v33 }
  0x49   : > { %v402_v15 = vsel %vm374_vm1, %v400_v3, %v2766_v55  ;;  %v2131_v30 = vmul.f32 %v1763_v13, %v1904_v42  ;;  %v751_v32 = vmul.f32 %v1765_v14, %v1898_v33  ;;  %v2144_v38 = vmul.f32 %v1765_v14, %v1904_v42  ;;  %v2148_v3 = vld [vmem:[%s1761_s13 + $0xb0] sm:$0xff] }
  0x4a   : > { %v1188_v39 = vmin.f32 %v1172_v4, 6.0  ;;  %v1002_v51 = vadd.f32 %v951_v54, %v878_v5  ;;  %v441_v23 = vadd.f32 %v402_v15, %v300_v47  ;;  %v527_v29 = vsel %vm499_vm2, %v525_v37, %v2765_v2 }
  0x4b   : > { %v685_v27 = vrot.slane %v627_v26, 1  ;;  %v2764_v0 = vrot.slane %v2131_v30, 1  ;;  %v809_v50 = vrot.slane %v751_v32, 2  ;;  %v870_v54 = vmul.f32 %v1771_v17, %v2139_v48 }
  0x4c   : > { %1575 = vmatmul.mubr.msk.f32.vlgmr.msra.gmra.mrb[0].mxu1 %vm1203_vm3, %v1188_v39  ;;  %v1126_v60 = vadd.f32 %v1075_v40, %v1002_v51  ;;  %v566_v47 = vadd.f32 %v527_v29, %v441_v23  ;;  %v911_v4 = vmul.f32 %v1773_v18, %v2139_v48  ;;  %v2767_v37 = vrot.slane %v2144_v38, 2 }
  0x4d   : > { %v687_v5 = vsel %vm374_vm1, %v685_v27, %v2764_v0  ;;  %v2160_v15 = vmul.f32 %v1773_v18, %v2148_v3  ;;  %v1035_v40 = vmul.f32 %v1775_v19, %v2139_v48  ;;  %v2167_v51 = vmul.f32 %v1775_v19, %v2148_v3 }
  0x4e   : > { %v1149_v26 = vadd.f32 %v1933_v25, %v1126_v60  ;;  %v602_v32 = vadd.f32 %v586_v61, %v566_v47  ;;  %v969_v39 = vrot.slane %v911_v4, 1  ;;  %v811_v23 = vsel %vm499_vm2, %v809_v50, %v2767_v37  ;;  %v2191_v37 = vld [vmem:[%s1761_s13 + $0x58] sm:$0x3] }
  0x4f   : > { %v2769_v29 = vrot.slane %v2160_v15, 1  ;;  %v1093_v27 = vrot.slane %v1035_v40, 2  ;;  %v293_v0 = vmul.f32 %v1753_v9, %v1781_v21  ;;  %v1094_v61 = vrot.slane %v2167_v51, 2 }
  0x50   : > { %v1165_v2 = vmax.f32 %v1149_v26, 0.0  ;;  %v726_v55 = vadd.f32 %v687_v5, %v602_v32  ;;  %v331_v60 = vmul.f32 %v1755_v10, %v1943_v46  ;;  %v456_v50 = vmul.f32 %v1757_v11, %v1943_v46 }
  0x51   : > { %v971_v47 = vsel %vm374_vm1, %v969_v39, %v2769_v29  ;;  %v579_v4 = vmul.f32 %v1759_v12, %v1825_v44  ;;  %v617_v21 = vmul.f32 %v1763_v13, %v1955_v1  ;;  %v1095_v26 = vsel %vm499_vm2, %v1093_v27, %v1094_v61 }
  0x52   : > { %v1181_v40 = vmin.f32 %v1165_v2, 6.0  ;;  %v850_v5 = vadd.f32 %v811_v23, %v726_v55  ;;  %v383_v32 = vrot.slane %v331_v60, 1  ;;  %v508_v16 = vrot.slane %v456_v50, 2 }
  0x53   : > { %v668_v39 = vrot.slane %v617_v21, 1  ;;  %v741_v46 = vmul.f32 %v1765_v14, %v1955_v1  ;;  %v863_v29 = vmul.f32 %v1771_v17, %v2073_v59  ;;  %v901_v2 = vmul.f32 %v1773_v18, %v2191_v37 }
  0x54   : > { %1565 = vmatprep.mubr.msk.f32.mxu0 %vm1203_vm3, %v1181_v40  ;;  %v886_v36 = vadd.f32 %v870_v54, %v850_v5  ;;  %v384_v55 = vsel %vm374_vm1, %v381_v41, %v383_v32  ;;  %v1025_v23 = vmul.f32 %v1775_v19, %v2191_v37  ;;  %v509_v60 = vsel %vm499_vm2, %v506_v20, %v508_v16 }
  0x55   : > { %v434_v27 = vadd.f32 %v384_v55, %v293_v0  ;;  %v669_v54 = vsel %vm374_vm1, %v666_v31, %v668_v39  ;;  %v792_v50 = vrot.slane %v741_v46, 2  ;;  %v952_v21 = vrot.slane %v901_v2, 1 }
  0x56   : > { %v1010_v45 = vadd.f32 %v971_v47, %v886_v36  ;;  %v1076_v41 = vrot.slane %v1025_v23, 2  ;;  %v301_v40 = vmul.f32 %v1753_v9, %v1879_v8  ;;  %v343_v56 = vmul.f32 %v1755_v10, %v1989_v6 }
  0x57   : > { %v559_v5 = vadd.f32 %v509_v60, %v434_v27  ;;  %v793_v0 = vsel %vm499_vm2, %v790_v35, %v792_v50  ;;  %v468_v20 = vmul.f32 %v1757_v11, %v1989_v6  ;;  %v2780_v31 = vrot.slane %v2085_v22, 1  ;;  %v2229_v35 = vld [vmem:[%s1761_s13 + $0xb8] sm:$0x3] }
  0x58   : > { %v1134_v57 = vadd.f32 %v1095_v26, %v1010_v45  ;;  %v2781_v16 = vrot.slane %v2095_v58, 2  ;;  %v587_v24 = vmul.f32 %v1759_v12, %v1904_v42  ;;  %v403_v39 = vrot.slane %v343_v56, 1 }
  0x59   : > { %v953_v36 = vsel %vm374_vm1, %v2780_v31, %v952_v21  ;;  %v595_v32 = vadd.f32 %v579_v4, %v559_v5  ;;  %v528_v46 = vrot.slane %v468_v20, 2  ;;  %v629_v55 = vmul.f32 %v1763_v13, %v2004_v7 }
  0x5a   : > { %v1077_v47 = vsel %vm499_vm2, %v2781_v16, %v1076_v41  ;;  %v1157_v26 = vadd.f32 %v1933_v25, %v1134_v57  ;;  %v753_v22 = vmul.f32 %v1765_v14, %v2004_v7  ;;  %v871_v58 = vmul.f32 %v1771_v17, %v2148_v3 }
  0x5b   : > { %v913_v2 = vmul.f32 %v1773_v18, %v2229_v35  ;;  %v719_v23 = vadd.f32 %v669_v54, %v595_v32  ;;  %v2782_v4 = vrot.slane %v2108_v53, 1  ;;  %v2783_v60 = vrot.slane %v2115_v28, 2 }
  0x5c   : > { %v688_v45 = vrot.slane %v629_v55, 1  ;;  %v1173_v21 = vmax.f32 %v1157_v26, 0.0  ;;  %v812_v5 = vrot.slane %v753_v22, 2  ;;  %v2784_v57 = vrot.slane %v2131_v30, 1 }
  0x5d   : > { %v404_v27 = vsel %vm374_vm1, %v2782_v4, %v403_v39  ;;  %v529_v50 = vsel %vm499_vm2, %v2783_v60, %v528_v46  ;;  %v972_v56 = vrot.slane %v913_v2, 1  ;;  %v843_v20 = vadd.f32 %v793_v0, %v719_v23 }
  0x5e   : > { %v442_v41 = vadd.f32 %v404_v27, %v301_v40  ;;  %v689_v31 = vsel %vm374_vm1, %v2784_v57, %v688_v45  ;;  %v1037_v54 = vmul.f32 %v1775_v19, %v2229_v35  ;;  %v294_v53 = vmul.f32 %v1753_v9, %v1806_v34 }
  0x5f   : > { %v1189_v16 = vmin.f32 %v1173_v21, 6.0  ;;  %v2785_v32 = vrot.slane %v2144_v38, 2  ;;  %v2786_v40 = vrot.slane %v2160_v15, 1  ;;  %v879_v46 = vadd.f32 %v863_v29, %v843_v20 }
  0x60   : > { %v567_v28 = vadd.f32 %v529_v50, %v442_v41  ;;  %v1096_v30 = vrot.slane %v1037_v54, 2  ;;  %v332_v55 = vmul.f32 %v1755_v10, %v1806_v34  ;;  %v2263_v26 = vmul.f32 %v1755_v10, %v1825_v44 }
  0x61   : > { %v813_v39 = vsel %vm499_vm2, %v2785_v32, %v812_v5  ;;  %v973_v0 = vsel %vm374_vm1, %v2786_v40, %v972_v56  ;;  %1577 = vmatprep.mubr.msk.f32.mxu1 %vm1203_vm3, %v1189_v16  ;;  %v457_v38 = vmul.f32 %v1757_v11, %v1806_v34  ;;  %v2270_v15 = vmul.f32 %v1757_v11, %v1825_v44 }
  0x62   : > { %v603_v22 = vadd.f32 %v587_v24, %v567_v28  ;;  %v580_v29 = vmul.f32 %v1759_v12, %v2065_v62  ;;  %v1003_v2 = vadd.f32 %v953_v36, %v879_v46  ;;  %v1097_v23 = vsel %vm499_vm2, %v1094_v61, %v1096_v30 }
  0x63   : > { %v385_v4 = vrot.slane %v332_v55, 1  ;;  %v386_v27 = vrot.slane %v2263_v26, 1  ;;  %v510_v24 = vrot.slane %v457_v38, 2  ;;  %v511_v50 = vrot.slane %v2270_v15, 2 }
  0x64   : > { %v727_v60 = vadd.f32 %v689_v31, %v603_v22  ;;  %v618_v34 = vmul.f32 %v1763_v13, %v2065_v62  ;;  %v1127_v45 = vadd.f32 %v1077_v47, %v1003_v2  ;;  %v2286_v51 = vmul.f32 %v1763_v13, %v2073_v59 }
  0x65   : > { %v387_v21 = vsel %vm374_vm1, %v385_v4, %v386_v27  ;;  %v742_v61 = vmul.f32 %v1765_v14, %v2065_v62  ;;  %v512_v5 = vsel %vm499_vm2, %v510_v24, %v511_v50  ;;  %v2297_v57 = vmul.f32 %v1765_v14, %v2073_v59 }
  0x66   : > { %v851_v36 = vadd.f32 %v813_v39, %v727_v60  ;;  %v435_v41 = vadd.f32 %v387_v21, %v294_v53  ;;  %v670_v56 = vrot.slane %v618_v34, 1  ;;  %v1150_v47 = vadd.f32 %v1933_v25, %v1127_v45 }
  0x67   : > { %v671_v20 = vrot.slane %v2286_v51, 1  ;;  %v794_v31 = vrot.slane %v742_v61, 2  ;;  %v864_v28 = vmul.f32 %v1771_v17, %v1822_v43  ;;  %v902_v53 = vmul.f32 %v1773_v18, %v1822_v43 }
  0x68   : > { %v887_v54 = vadd.f32 %v871_v58, %v851_v36  ;;  %v560_v16 = vadd.f32 %v512_v5, %v435_v41  ;;  %v1166_v32 = vmax.f32 %v1150_v47, 0.0  ;;  %v795_v40 = vrot.slane %v2297_v57, 2 }
  0x69   : > { %v672_v39 = vsel %vm374_vm1, %v670_v56, %v671_v20  ;;  %v2309_v46 = vmul.f32 %v1773_v18, %v1835_v49  ;;  %v954_v55 = vrot.slane %v902_v53, 1  ;;  %v1026_v22 = vmul.f32 %v1775_v19, %v1822_v43 }
  0x6a   : > { %v1011_v30 = vadd.f32 %v973_v0, %v887_v54  ;;  %v596_v58 = vadd.f32 %v580_v29, %v560_v16  ;;  %v1182_v38 = vmin.f32 %v1166_v32, 6.0  ;;  %v796_v2 = vsel %vm499_vm2, %v794_v31, %v795_v40 }
  0x6b   : > { %v955_v4 = vrot.slane %v2309_v46, 1  ;;  %v2319_v60 = vmul.f32 %v1775_v19, %v1835_v49  ;;  %v1078_v45 = vrot.slane %v1026_v22, 2  ;;  %v302_v0 = vmul.f32 %v1753_v9, %v1898_v33 }
  0x6c   : > { %v1135_v24 = vadd.f32 %v1097_v23, %v1011_v30  ;;  %v720_v34 = vadd.f32 %v672_v39, %v596_v58  ;;  %1566 = vmatmul.mubr.msk.f32.gmra.mrb[2].mxu0 %vm1203_vm3, %v1182_v38  ;;  %v344_v61 = vmul.f32 %v1755_v10, %v1898_v33  ;;  %v2332_v36 = vmul.f32 %v1755_v10, %v1904_v42 }
  0x6d   : > { %v956_v29 = vsel %vm374_vm1, %v954_v55, %v955_v4  ;;  %v2775_v21 = vrot.slane %v2319_v60, 2  ;;  %v469_v5 = vmul.f32 %v1757_v11, %v1898_v33  ;;  %v2339_v56 = vmul.f32 %v1757_v11, %v1904_v42 }
  0x6e   : > { %v1158_v23 = vadd.f32 %v1933_v25, %v1135_v24  ;;  %v844_v41 = vadd.f32 %v796_v2, %v720_v34  ;;  %v405_v31 = vrot.slane %v344_v61, 1  ;;  %v2773_v54 = vrot.slane %v2332_v36, 1  ;;  %v2363_v34 = vld [vmem:[%s1761_s13 + $0xc0] sm:$0xff] }
  0x6f   : > { %v1080_v47 = vsel %vm499_vm2, %v1078_v45, %v2775_v21  ;;  %v588_v16 = vmul.f32 %v1759_v12, %v2139_v48  ;;  %v530_v39 = vrot.slane %v469_v5, 2  ;;  %v2772_v33 = vrot.slane %v2339_v56, 2 }
  0x70   : > { %v1174_v53 = vmax.f32 %v1158_v23, 0.0  ;;  %v880_v32 = vadd.f32 %v864_v28, %v844_v41  ;;  %v407_v30 = vsel %vm374_vm1, %v405_v31, %v2773_v54  ;;  %v630_v58 = vmul.f32 %v1763_v13, %v2139_v48  ;;  %v2372_v31 = vld [vmem:[%s1761_s13 + $0xc8] sm:$0xff] }
  0x71   : > { %v2355_v55 = vmul.f32 %v1763_v13, %v2148_v3  ;;  %v754_v22 = vmul.f32 %v1765_v14, %v2139_v48  ;;  %v443_v2 = vadd.f32 %v407_v30, %v302_v0  ;;  %v532_v24 = vsel %vm499_vm2, %v530_v39, %v2772_v33 }
  0x72   : > { %v1190_v38 = vmin.f32 %v1174_v53, 6.0  ;;  %v1004_v28 = vadd.f32 %v956_v29, %v880_v32  ;;  %v690_v45 = vrot.slane %v630_v58, 1  ;;  %v2368_v23 = vmul.f32 %v1765_v14, %v2148_v3 }
  0x73   : > { %v2771_v61 = vrot.slane %v2355_v55, 1  ;;  %v814_v41 = vrot.slane %v754_v22, 2  ;;  %v568_v0 = vadd.f32 %v532_v24, %v443_v2  ;;  %v872_v29 = vmul.f32 %v1771_v17, %v2363_v34 }
  0x74   : > { %1578 = vmatmul.mubr.msk.f32.gmra.mrb[2].mxu1 %vm1203_vm3, %v1190_v38  ;;  %v1128_v5 = vadd.f32 %v1080_v47, %v1004_v28  ;;  %v914_v53 = vmul.f32 %v1773_v18, %v2363_v34  ;;  %v2774_v39 = vrot.slane %v2368_v23, 2  ;;  %v2384_v30 = vmul.f32 %v1773_v18, %v2372_v31 }
  0x75   : > { %v692_v32 = vsel %vm374_vm1, %v690_v45, %v2771_v61  ;;  %v1038_v47 = vmul.f32 %v1775_v19, %v2363_v34  ;;  %v604_v22 = vadd.f32 %v588_v16, %v568_v0  ;;  %v2391_v28 = vmul.f32 %v1775_v19, %v2372_v31 }
  0x76   : > { %v1151_v58 = vadd.f32 %v1933_v25, %v1128_v5  ;;  %v974_v38 = vrot.slane %v914_v53, 1  ;;  %v816_v2 = vsel %vm499_vm2, %v814_v41, %v2774_v39  ;;  %v2776_v24 = vrot.slane %v2384_v30, 1 }
  0x77   : > { %v1098_v45 = vrot.slane %v1038_v47, 2  ;;  %v295_v61 = vmul.f32 %v1753_v9, %v1825_v44  ;;  %v728_v54 = vadd.f32 %v692_v32, %v604_v22  ;;  %v1099_v5 = vrot.slane %v2391_v28, 2 }
  0x78   : > { %v1167_v33 = vmax.f32 %v1151_v58, 0.0  ;;  %v334_v16 = vmul.f32 %v1755_v10, %v1955_v1  ;;  %v976_v0 = vsel %vm374_vm1, %v974_v38, %v2776_v24  ;;  %v459_v41 = vmul.f32 %v1757_v11, %v1955_v1 }
  0x79   : > { %v581_v53 = vmul.f32 %v1759_v12, %v2073_v59  ;;  %v620_v44 = vmul.f32 %v1763_v13, %v2191_v37  ;;  %v852_v32 = vadd.f32 %v816_v2, %v728_v54  ;;  %v1100_v58 = vsel %vm499_vm2, %v1098_v45, %v1099_v5 }
  0x7a   : > { %v1183_v47 = vmin.f32 %v1167_v33, 6.0  ;;  %v388_v22 = vrot.slane %v334_v16, 1  ;;  %v513_v39 = vrot.slane %v459_v41, 2  ;;  %v744_v38 = vmul.f32 %v1765_v14, %v2191_v37 }
  0x7b   : > { %v673_v21 = vrot.slane %v620_v44, 1  ;;  %v865_v1 = vmul.f32 %v1771_v17, %v1835_v49  ;;  %v888_v24 = vadd.f32 %v872_v29, %v852_v32  ;;  %v904_v33 = vmul.f32 %v1773_v18, %v1970_v52 }
  0x7c   : > { %1568 = vmatprep.mubr.msk.f32.mxu0 %vm1203_vm3, %v1183_v47  ;;  %v389_v54 = vsel %vm374_vm1, %v386_v27, %v388_v22  ;;  %v1028_v2 = vmul.f32 %v1775_v19, %v1970_v52  ;;  %v514_v16 = vsel %vm499_vm2, %v511_v50, %v513_v39  ;;  %v797_v41 = vrot.slane %v744_v38, 2 }
  0x7d   : > { %v436_v45 = vadd.f32 %v389_v54, %v295_v61  ;;  %v674_v29 = vsel %vm374_vm1, %v671_v20, %v673_v21  ;;  %v1012_v26 = vadd.f32 %v976_v0, %v888_v24  ;;  %v957_v44 = vrot.slane %v904_v33, 1 }
  0x7e   : > { %v1081_v27 = vrot.slane %v1028_v2, 2  ;;  %v303_v47 = vmul.f32 %v1753_v9, %v1904_v42  ;;  %v798_v61 = vsel %vm499_vm2, %v795_v40, %v797_v41  ;;  %v346_v15 = vmul.f32 %v1755_v10, %v2004_v7  ;;  %v2450_v40 = vld [vmem:[%s1761_s13 + $0xd0] sm:$0x3] }
  0x7f   : > { %v561_v32 = vadd.f32 %v514_v16, %v436_v45  ;;  %v471_v50 = vmul.f32 %v1757_v11, %v2004_v7  ;;  %v1136_v51 = vadd.f32 %v1100_v58, %v1012_v26  ;;  %v958_v20 = vsel %vm374_vm1, %v955_v4, %v957_v44 }
  0x80   : > { %v2787_v21 = vrot.slane %v2319_v60, 2  ;;  %v589_v57 = vmul.f32 %v1759_v12, %v2148_v3  ;;  %v408_v24 = vrot.slane %v346_v15, 1  ;;  %v632_v7 = vmul.f32 %v1763_v13, %v2229_v35 }
  0x81   : > { %v597_v39 = vadd.f32 %v581_v53, %v561_v32  ;;  %v533_v0 = vrot.slane %v471_v50, 2  ;;  %v1159_v58 = vadd.f32 %v1933_v25, %v1136_v51  ;;  %v756_v46 = vmul.f32 %v1765_v14, %v2229_v35 }
  0x82   : > { %v1082_v42 = vsel %vm499_vm2, %v2787_v21, %v1081_v27  ;;  %v873_v4 = vmul.f32 %v1771_v17, %v2372_v31  ;;  %v916_v60 = vmul.f32 %v1773_v18, %v2450_v40  ;;  %v2788_v53 = vrot.slane %v2332_v36, 1 }
  0x83   : > { %v721_v22 = vadd.f32 %v674_v29, %v597_v39  ;;  %v2789_v54 = vrot.slane %v2339_v56, 2  ;;  %v693_v2 = vrot.slane %v632_v7, 1  ;;  %v1175_v45 = vmax.f32 %v1159_v58, 0.0 }
  0x84   : > { %v409_v38 = vsel %vm374_vm1, %v2788_v53, %v408_v24  ;;  %v817_v41 = vrot.slane %v756_v46, 2  ;;  %v977_v26 = vrot.slane %v916_v60, 1  ;;  %v2790_v27 = vrot.slane %v2355_v55, 1 }
  0x85   : > { %v534_v33 = vsel %vm499_vm2, %v2789_v54, %v533_v0  ;;  %v444_v16 = vadd.f32 %v409_v38, %v303_v47  ;;  %v845_v44 = vadd.f32 %v798_v61, %v721_v22  ;;  %v1040_v29 = vmul.f32 %v1775_v19, %v2450_v40 }
  0x86   : > { %v694_v32 = vsel %vm374_vm1, %v2790_v27, %v693_v2  ;;  %v296_v36 = vmul.f32 %v1753_v9, %v2065_v62  ;;  %v1191_v15 = vmin.f32 %v1175_v45, 6.0  ;;  %v2791_v50 = vrot.slane %v2368_v23, 2 }
  0x87   : > { %v569_v56 = vadd.f32 %v534_v33, %v444_v16  ;;  %v2792_v47 = vrot.slane %v2384_v30, 1  ;;  %v881_v21 = vadd.f32 %v865_v1, %v845_v44  ;;  %v1101_v55 = vrot.slane %v1040_v29, 2 }
  0x88   : > { %v818_v51 = vsel %vm499_vm2, %v2791_v50, %v817_v41  ;;  %v335_v39 = vmul.f32 %v1755_v10, %v2065_v62  ;;  %v2484_v24 = vmul.f32 %v1755_v10, %v2073_v59  ;;  %1580 = vmatprep.mubr.msk.f32.mxu1 %vm1203_vm3, %v1191_v15  ;;  %v460_v23 = vmul.f32 %v1757_v11, %v2065_v62 }
  0x89   : > { %v978_v61 = vsel %vm374_vm1, %v2792_v47, %v977_v26  ;;  %v605_v0 = vadd.f32 %v589_v57, %v569_v56  ;;  %v2491_v30 = vmul.f32 %v1757_v11, %v2073_v59  ;;  %v582_v1 = vmul.f32 %v1759_v12, %v1822_v43 }
  0x8a   : > { %v1005_v7 = vadd.f32 %v958_v20, %v881_v21  ;;  %v1102_v58 = vsel %vm499_vm2, %v1099_v5, %v1101_v55  ;;  %v390_v46 = vrot.slane %v335_v39, 1  ;;  %v391_v60 = vrot.slane %v2484_v24, 1 }
  0x8b   : > { %v729_v22 = vadd.f32 %v694_v32, %v605_v0  ;;  %v515_v57 = vrot.slane %v460_v23, 2  ;;  %v516_v53 = vrot.slane %v2491_v30, 2  ;;  %v621_v62 = vmul.f32 %v1763_v13, %v1822_v43 }
  0x8c   : > { %v1129_v38 = vadd.f32 %v1082_v42, %v1005_v7  ;;  %v392_v54 = vsel %vm374_vm1, %v390_v46, %v391_v60  ;;  %v2507_v28 = vmul.f32 %v1763_v13, %v1835_v49  ;;  %v745_v5 = vmul.f32 %v1765_v14, %v1822_v43 }
  0x8d   : > { %v853_v20 = vadd.f32 %v818_v51, %v729_v22  ;;  %v437_v33 = vadd.f32 %v392_v54, %v296_v36  ;;  %v517_v2 = vsel %vm499_vm2, %v515_v57, %v516_v53  ;;  %v675_v45 = vrot.slane %v621_v62, 1 }
  0x8e   : > { %v1152_v42 = vadd.f32 %v1933_v25, %v1129_v38  ;;  %v676_v16 = vrot.slane %v2507_v28, 1  ;;  %v2518_v41 = vmul.f32 %v1765_v14, %v1835_v49  ;;  %v799_v26 = vrot.slane %v745_v5, 2 }
  0x8f   : > { %v889_v44 = vadd.f32 %v873_v4, %v853_v20  ;;  %v562_v27 = vadd.f32 %v517_v2, %v437_v33  ;;  %v866_v43 = vmul.f32 %v1771_v17, %v1861_v63  ;;  %v905_v32 = vmul.f32 %v1773_v18, %v1861_v63 }
  0x90   : > { %v1168_v29 = vmax.f32 %v1152_v42, 0.0  ;;  %v677_v36 = vsel %vm374_vm1, %v675_v45, %v676_v16  ;;  %v800_v15 = vrot.slane %v2518_v41, 2  ;;  %v2530_v49 = vmul.f32 %v1773_v18, %v1879_v8  ;;  %v280_v42 = vld [vmem:[%s1761_s13 + $0xd8] sm:$0xff] }
  0x91   : > { %v1013_v56 = vadd.f32 %v978_v61, %v889_v44  ;;  %v598_v4 = vadd.f32 %v582_v1, %v562_v27  ;;  %v959_v50 = vrot.slane %v905_v32, 1  ;;  %v1029_v51 = vmul.f32 %v1775_v19, %v1861_v63 }
  0x92   : > { %v1184_v47 = vmin.f32 %v1168_v29, 6.0  ;;  %v801_v21 = vsel %vm499_vm2, %v799_v26, %v800_v15  ;;  %v960_v55 = vrot.slane %v2530_v49, 1  ;;  %v2540_v39 = vmul.f32 %v1775_v19, %v1879_v8 }
  0x93   : > { %v1137_v0 = vadd.f32 %v1102_v58, %v1013_v56  ;;  %v722_v23 = vadd.f32 %v677_v36, %v598_v4  ;;  %v1083_v7 = vrot.slane %v1029_v51, 2  ;;  %v304_v61 = vmul.f32 %v1753_v9, %v2139_v48  ;;  %v2582_v36 = vld [vmem:[%s1761_s13 + $0xe0] sm:$0xff] }
  0x94   : > { %1569 = vmatmul.mubr.msk.f32.gmra.mrb[4].mxu0 %vm1203_vm3, %v1184_v47  ;;  %v961_v63 = vsel %vm374_vm1, %v959_v50, %v960_v55  ;;  %v1084_v1 = vrot.slane %v2540_v39, 2  ;;  %v347_v46 = vmul.f32 %v1755_v10, %v2139_v48  ;;  %v2553_v8 = vmul.f32 %v1755_v10, %v2148_v3 }
  0x95   : > { %v1160_v58 = vadd.f32 %v1933_v25, %v1137_v0  ;;  %v846_v22 = vadd.f32 %v801_v21, %v722_v23  ;;  %v472_v57 = vmul.f32 %v1757_v11, %v2139_v48  ;;  %v2560_v62 = vmul.f32 %v1757_v11, %v2148_v3 }
  0x96   : > { %v1085_v38 = vsel %vm499_vm2, %v1083_v7, %v1084_v1  ;;  %v410_v54 = vrot.slane %v347_v46, 1  ;;  %v411_v5 = vrot.slane %v2553_v8, 1  ;;  %v590_v20 = vmul.f32 %v1759_v12, %v2363_v34 }
  0x97   : > { %v1176_v33 = vmax.f32 %v1160_v58, 0.0  ;;  %v882_v2 = vadd.f32 %v866_v43, %v846_v22  ;;  %v535_v45 = vrot.slane %v472_v57, 2  ;;  %v536_v48 = vrot.slane %v2560_v62, 2 }
  0x98   : > { %v412_v26 = vsel %vm374_vm1, %v410_v54, %v411_v5  ;;  %v633_v44 = vmul.f32 %v1763_v13, %v2363_v34  ;;  %v2577_v27 = vmul.f32 %v1763_v13, %v2372_v31  ;;  %v757_v32 = vmul.f32 %v1765_v14, %v2363_v34 }
  0x99   : > { %v1192_v29 = vmin.f32 %v1176_v33, 6.0  ;;  %v1006_v43 = vadd.f32 %v961_v63, %v882_v2  ;;  %v445_v56 = vadd.f32 %v412_v26, %v304_v61  ;;  %v537_v4 = vsel %vm499_vm2, %v535_v45, %v536_v48 }
  0x9a   : > { %v695_v50 = vrot.slane %v633_v44, 1  ;;  %v696_v51 = vrot.slane %v2577_v27, 1  ;;  %v2590_v47 = vmul.f32 %v1765_v14, %v2372_v31  ;;  %v819_v21 = vrot.slane %v757_v32, 2 }
  0x9b   : > { %1581 = vmatmul.mubr.msk.f32.gmra.mrb[4].mxu1 %vm1203_vm3, %v1192_v29  ;;  %v1130_v34 = vadd.f32 %v1085_v38, %v1006_v43  ;;  %v570_v0 = vadd.f32 %v537_v4, %v445_v56  ;;  %v917_v23 = vmul.f32 %v1773_v18, %v280_v42  ;;  %v2600_v63 = vmul.f32 %v1773_v18, %v2582_v36 }
  0x9c   : > { %v697_v7 = vsel %vm374_vm1, %v695_v50, %v696_v51  ;;  %v820_v61 = vrot.slane %v2590_v47, 2  ;;  %v1041_v46 = vmul.f32 %v1775_v19, %v280_v42  ;;  %v2606_v57 = vmul.f32 %v1775_v19, %v2582_v36 }
  0x9d   : > { %v1153_v58 = vadd.f32 %v1933_v25, %v1130_v34  ;;  %v606_v22 = vadd.f32 %v590_v20, %v570_v0  ;;  %v874_v54 = vmul.f32 %v1771_v17, %v280_v42  ;;  %v979_v33 = vrot.slane %v917_v23, 1 }
  0x9e   : > { %v821_v38 = vsel %vm499_vm2, %v819_v21, %v820_v61  ;;  %v980_v2 = vrot.slane %v2600_v63, 1  ;;  %v1103_v44 = vrot.slane %v1041_v46, 2  ;;  %v337_v25 = vmul.f32 %v1755_v10, %v2191_v37  ;;  %v1523_v63 = vld [vmem:[%s2759_s4] ss:$0 sm:$0xff] }
  0x9f   : > { %v1169_v45 = vmax.f32 %v1153_v58, 0.0  ;;  %v730_v26 = vadd.f32 %v697_v7, %v606_v22  ;;  %v1104_v20 = vrot.slane %v2606_v57, 2  ;;  %v297_v32 = vmul.f32 %v1753_v9, %v2073_v59  ;;  %v1629_v58 = vld [vmem:[%s1761_s13 + $0x68] sm:$0xff] }
  0xa0   : > { %v462_v29 = vmul.f32 %v1757_v11, %v2191_v37  ;;  %v623_v42 = vmul.f32 %v1763_v13, %v1970_v52  ;;  %v393_v4 = vrot.slane %v337_v25, 1  ;;  %v981_v50 = vsel %vm374_vm1, %v979_v33, %v980_v2 }
  0xa1   : > { %v1185_v43 = vmin.f32 %v1169_v45, 6.0  ;;  %v854_v56 = vadd.f32 %v821_v38, %v730_v26  ;;  %v747_v34 = vmul.f32 %v1765_v14, %v1970_v52  ;;  %v1105_v23 = vsel %vm499_vm2, %v1103_v44, %v1104_v20 }
  0xa2   : > { %v518_v21 = vrot.slane %v462_v29, 2  ;;  %v394_v37 = vsel %vm374_vm1, %v391_v60, %v393_v4  ;;  %v678_v0 = vrot.slane %v623_v42, 1  ;;  %v583_v52 = vmul.f32 %v1629_v58, %v1759_v12  ;;  %v1630_v60 = vld [vmem:[%s1761_s13 + $0x80] sm:$0xff] }
  0xa3   : > { %1571 = vmatprep.mubr.msk.f32.mxu0 %vm1203_vm3, %v1185_v43  ;;  %v890_v59 = vadd.f32 %v874_v54, %v854_v56  ;;  %v438_v7 = vadd.f32 %v394_v37, %v297_v32  ;;  %v802_v38 = vrot.slane %v747_v34, 2  ;;  %v907_v24 = vmul.f32 %v1773_v18, %v1989_v6 }
  0xa4   : > { %v519_v46 = vsel %vm499_vm2, %v516_v53, %v518_v21  ;;  %v867_v33 = vmul.f32 %v1630_v60, %v1771_v17  ;;  %v349_v45 = vmul.f32 %v1755_v10, %v2229_v35  ;;  %v474_v30 = vmul.f32 %v1757_v11, %v2229_v35  ;;  %v1631_v11 = vld [vmem:[%s2757_s2] ss:$0 sm:$0xff] }
  0xa5   : > { %v1014_v22 = vadd.f32 %v981_v50, %v890_v59  ;;  %v563_v54 = vadd.f32 %v519_v46, %v438_v7  ;;  %v679_v26 = vsel %vm374_vm1, %v676_v16, %v678_v0  ;;  %v1031_v44 = vmul.f32 %v1775_v19, %v1989_v6  ;;  %v282_v6 = vld [vmem:[%s1761_s13 + $0xe8] sm:$0x3] }
  0xa6   : > { %v305_v25 = vmul.f32 %v1753_v9, %v2148_v3  ;;  %v413_v29 = vrot.slane %v349_v45, 1  ;;  %v538_v42 = vrot.slane %v474_v30, 2  ;;  %v635_v10 = vmul.f32 %v1763_v13, %v2450_v40 }
  0xa7   : > { %v1138_v53 = vadd.f32 %v1105_v23, %v1014_v22  ;;  %v599_v32 = vadd.f32 %v583_v52, %v563_v54  ;;  %v803_v28 = vsel %vm499_vm2, %v800_v15, %v802_v38  ;;  %v962_v16 = vrot.slane %v907_v24, 1 }
  0xa8   : > { %v759_v9 = vmul.f32 %v1765_v14, %v2450_v40  ;;  %v414_v43 = vsel %vm374_vm1, %v411_v5, %v413_v29  ;;  %v539_v13 = vsel %vm499_vm2, %v536_v48, %v538_v42  ;;  %v698_v56 = vrot.slane %v635_v10, 1 }
  0xa9   : > { %v1161_v35 = vadd.f32 %v1631_v11, %v1138_v53  ;;  %v723_v3 = vadd.f32 %v679_v26, %v599_v32  ;;  %v1086_v50 = vrot.slane %v1031_v44, 2  ;;  %v446_v41 = vadd.f32 %v414_v43, %v305_v25 }
  0xaa   : > { %v591_v15 = vmul.f32 %v1759_v12, %v2372_v31  ;;  %v822_v34 = vrot.slane %v759_v9, 2  ;;  %v919_v14 = vmul.f32 %v1773_v18, %v282_v6  ;;  %v963_v8 = vsel %vm374_vm1, %v960_v55, %v962_v16 }
  0xab   : > { %v1177_v4 = vmax.f32 %v1161_v35, 0.0  ;;  %v847_v21 = vadd.f32 %v803_v28, %v723_v3  ;;  %v571_v5 = vadd.f32 %v539_v13, %v446_v41  ;;  %v699_v48 = vsel %vm374_vm1, %v696_v51, %v698_v56 }
  0xac   : > { %v1043_v59 = vmul.f32 %v1775_v19, %v282_v6  ;;  %v1087_v12 = vsel %vm499_vm2, %v1084_v1, %v1086_v50  ;;  %v823_v49 = vsel %vm499_vm2, %v820_v61, %v822_v34  ;;  %v982_v55 = vrot.slane %v919_v14, 1 }
  0xad   : > { %v1193_v40 = vmin.f32 %v1177_v4, 6.0  ;;  %v883_v62 = vadd.f32 %v867_v33, %v847_v21  ;;  %v607_v18 = vadd.f32 %v591_v15, %v571_v5  ;;  %v875_v27 = vmul.f32 %v1771_v17, %v2582_v36 }
  0xae   : > { %v1106_v19 = vrot.slane %v1043_v59, 2  ;;  %v983_v39 = vsel %vm374_vm1, %v980_v2, %v982_v55 }
  0xaf   : > { %1583 = vmatprep.mubr.msk.f32.mxu1 %vm1203_vm3, %v1193_v40  ;;  %v1007_v31 = vadd.f32 %v963_v8, %v883_v62  ;;  %v731_v37 = vadd.f32 %v699_v48, %v607_v18 }
  0xb0   : > { %v1107_v47 = vsel %vm499_vm2, %v1104_v20, %v1106_v19 }
  0xb1   : > { %v1131_v51 = vadd.f32 %v1087_v12, %v1007_v31  ;;  %v855_v0 = vadd.f32 %v823_v49, %v731_v37 }
  0xb3   : > { %v1154_v23 = vadd.f32 %v1631_v11, %v1131_v51  ;;  %v891_v1 = vadd.f32 %v875_v27, %v855_v0 }
  0xb5   : > { %v1170_v7 = vmax.f32 %v1154_v23, 0.0  ;;  %v1015_v61 = vadd.f32 %v983_v39, %v891_v1 }
  0xb7   : > { %v1186_v46 = vmin.f32 %v1170_v7, 6.0  ;;  %v1139_v58 = vadd.f32 %v1107_v47, %v1015_v61 }
  0xb9   : > { %1572 = vmatmul.mubr.msk.f32.gmra.mrb[6].mxu0 %vm1203_vm3, %v1186_v46  ;;  %v1162_v17 = vadd.f32 %v1631_v11, %v1139_v58 }
  0xbb   : > { %v1178_v36 = vmax.f32 %v1162_v17, 0.0 }
  0xbd   : > { %v1194_v52 = vmin.f32 %v1178_v36, 6.0 }
  0xbf   : > { %1584 = vmatmul.mubr.msk.f32.gmra.mrb[6].mxu1 %vm1203_vm3, %v1194_v52 }
 0x116   : > { %v1564_v57 = vpop.f32.mrb[0].mxu0 }
 0x117   : > { %v1328_v2 = vadd.f32 %v1564_v57, %v1523_v63  ;;  %v1322_v20 = vpop.f32.mrb[1].mxu0 }
 0x118   : > { %v1323_v22 = vadd.f32 %v1523_v63, %v1322_v20 }
 0x119   : > { %1403 = vst.msk [vmem:[%s2706_s9 + $0x8] sm:$0xff] %vm1401_vm4, %v1328_v2 }
 0x11a   : > { %1402 = vst.msk [vmem:[%s2706_s9] sm:$0xff] %vm1401_vm4, %v1323_v22 }
 0x11f   : > { %v1576_v38 = vpop.f32.mrb[0].mxu1 }
 0x120   : > { %v1368_v24 = vadd.f32 %v1576_v38, %v1523_v63  ;;  %v1362_v54 = vpop.f32.mrb[1].mxu1 }
 0x121   : > { %v1363_v60 = vadd.f32 %v1523_v63, %v1362_v54 }
 0x122   : > { %1411 = vst.msk [vmem:[%s2706_s9 + $0x48] sm:$0xff] %vm1401_vm4, %v1368_v24 }
 0x123   : > { %1410 = vst.msk [vmem:[%s2706_s9 + $0x40] sm:$0xff] %vm1401_vm4, %v1363_v60 }
 0x13f   : > { %v1567_v33 = vpop.f32.mrb[2].mxu0 }
 0x140   : > { %v1338_v45 = vadd.f32 %v1567_v33, %v1523_v63  ;;  %v1332_v30 = vpop.f32.mrb[3].mxu0 }
 0x141   : > { %v1333_v53 = vadd.f32 %v1523_v63, %v1332_v30 }
 0x142   : > { %1405 = vst.msk [vmem:[%s2706_s9 + $0x18] sm:$0xff] %vm1401_vm4, %v1338_v45 }
 0x143   : > { %1404 = vst.msk [vmem:[%s2706_s9 + $0x10] sm:$0xff] %vm1401_vm4, %v1333_v53 }
 0x147   : > { %v1579_v26 = vpop.f32.mrb[2].mxu1 }
 0x148   : > { %v1378_v44 = vadd.f32 %v1579_v26, %v1523_v63  ;;  %v1372_v25 = vpop.f32.mrb[3].mxu1 }
 0x149   : > { %v1373_v32 = vadd.f32 %v1523_v63, %v1372_v25 }
 0x14a   : > { %1413 = vst.msk [vmem:[%s2706_s9 + $0x58] sm:$0xff] %vm1401_vm4, %v1378_v44 }
 0x14b   : > { %1412 = vst.msk [vmem:[%s2706_s9 + $0x50] sm:$0xff] %vm1401_vm4, %v1373_v32 }
 0x167   : > { %v1570_v29 = vpop.f32.mrb[4].mxu0 }
 0x168   : > { %v1348_v42 = vadd.f32 %v1570_v29, %v1523_v63  ;;  %v1342_v10 = vpop.f32.mrb[5].mxu0 }
 0x169   : > { %v1343_v11 = vadd.f32 %v1523_v63, %v1342_v10 }
 0x16a   : > { %1407 = vst.msk [vmem:[%s2706_s9 + $0x28] sm:$0xff] %vm1401_vm4, %v1348_v42 }
 0x16b   : > { %1406 = vst.msk [vmem:[%s2706_s9 + $0x20] sm:$0xff] %vm1401_vm4, %v1343_v11 }
 0x16e   : > { %v1582_v35 = vpop.f32.mrb[4].mxu1 }
 0x16f   : > { %v1388_v28 = vadd.f32 %v1582_v35, %v1523_v63  ;;  %v1382_v16 = vpop.f32.mrb[5].mxu1 }
 0x170   : > { %v1383_v6 = vadd.f32 %v1523_v63, %v1382_v16 }
 0x171   : > { %1415 = vst.msk [vmem:[%s2706_s9 + $0x68] sm:$0xff] %vm1401_vm4, %v1388_v28 }
 0x172   : > { %1414 = vst.msk [vmem:[%s2706_s9 + $0x60] sm:$0xff] %vm1401_vm4, %v1383_v6 }
 0x18c   : > { %v1573_v9 = vpop.f32.mrb[6].mxu0 }
 0x18d   : > { %v1358_v3 = vadd.f32 %v1573_v9, %v1523_v63  ;;  %v1352_v43 = vpop.f32.mrb[7].mxu0 }
 0x18e   : > { %v1353_v13 = vadd.f32 %v1523_v63, %v1352_v43 }
 0x18f   : > { %1409 = vst.msk [vmem:[%s2706_s9 + $0x38] sm:$0xff] %vm1401_vm4, %v1358_v3 }
 0x190   : > { %1408 = vst.msk [vmem:[%s2706_s9 + $0x30] sm:$0xff] %vm1401_vm4, %v1353_v13 }
 0x192   : > { %v1585_v56 = vpop.f32.mrb[6].mxu1 }
 0x193   : > { %v1398_v4 = vadd.f32 %v1585_v56, %v1523_v63  ;;  %v1392_v50 = vpop.f32.mrb[7].mxu1 }
 0x194   : > { %v1393_v41 = vadd.f32 %v1523_v63, %v1392_v50 }
 0x195   : > { %1417 = vst.msk [vmem:[%s2706_s9 + $0x78] sm:$0xff] %vm1401_vm4, %v1398_v4 }
 0x196   : > { %1416 = vst.msk [vmem:[%s2706_s9 + $0x70] sm:$0xff] %vm1401_vm4, %v1393_v41 }
 0x197 PF: > { %s15_s22 = sadd.s32 1, %s1670_s22   ;;  %s2793_s18 = smov %s1662_s20 }
 0x198   : > { %p12_p7 = scmp.ge.s32.totalorder %s15_s22, 6   ;;  %s2794_s19 = smov %s1666_s21 }
 0x199   : > { %s2795_s20 = smov %s2798_s23  ;;  %s2796_s21 = smov %s2802_s24 }
 0x19a   :  { %14 = sbr.rel (!%p12_p7) target bundleno = 3 (0x3), region = 71 }

</bundles_post_ra>
